<compile_context>
chip_gen: v7x
topology: tpu7x:2x2x1
jax: 0.10.0
libtpu: 0.0.40
codegen_flags: <defaults>
</compile_context>

<pallas_src>
import functools

import jax
import jax.numpy as jnp
from jax.experimental import pallas as pl
from jax.experimental.pallas import tpu as pltpu


_VMEM_LIMIT_BYTES = 32 * 1024 * 1024   # safe scoped budget on v5e/v6e/v7x


def _round_up(n, m):
    return ((n + m - 1) // m) * m


def _choose_l_tile(length, target=1024):
    """Largest L tile <= target that is a multiple of 128 and divides L
    (or L itself if L <= target)."""
    if length <= target:
        return length
    t = (target // 128) * 128
    while t >= 128:
        if length % t == 0:
            return t
        t -= 128
    # TODO(synk): masked remainder handling when L has no 128-multiple divisor.
    return length


# ----------------------------------------------------------------------------
# Kernel 1: per-batch attention statistics (tiny outputs, no z materialized)
#   accumulated over L tiles directly in the resident output blocks:
#     M_raw = sum_L-tiles g @ phi^T          (Co_p, Co_p)
#     G     = sum_L-tiles theta @ theta^T    (Co_p, Co_p)
#     s     = sum_L theta                    (Co_p, 1)   (written once / batch)
# ----------------------------------------------------------------------------
def _attn_stats_kernel(x_ref, wproj_ref, bproj_ref, m_ref, g_ref, s_ref,
                       *, co_p, compute_dtype):
    li = pl.program_id(1)

    @pl.when(li == 0)
    def _():
        m_ref[...] = jnp.zeros_like(m_ref)
        g_ref[...] = jnp.zeros_like(g_ref)
        s_ref[...] = jnp.zeros_like(s_ref)

    cd = compute_dtype
    xc = x_ref[0].astype(cd)                                     # (C, tL)

    # Fused 1x1-conv projections (one MXU op); single early cast to cd, then
    # slice at Co_p multiples (sublane-aligned -> views, no relayout copies).
    proj = (jnp.dot(wproj_ref[...], xc, preferred_element_type=jnp.float32)
            + bproj_ref[...]).astype(cd)                         # (3*Co_p, tL)
    g = proj[0 * co_p:1 * co_p]
    th = proj[1 * co_p:2 * co_p]
    ph = proj[2 * co_p:3 * co_p]

    # Contractions over L (A @ B^T form via dot_general; no explicit transpose).
    m_ref[0] += jax.lax.dot_general(
        g, ph, (((1,), (1,)), ((), ())), preferred_element_type=jnp.float32)
    g_ref[0] += jax.lax.dot_general(
        th, th, (((1,), (1,)), ((), ())), preferred_element_type=jnp.float32)
    s_ref[0] += jnp.sum(th.astype(jnp.float32), axis=1, keepdims=True)


# ----------------------------------------------------------------------------
# Kernel 2: recompute theta per tile, z = A @ theta + bw, BN apply [+ residual]
# ----------------------------------------------------------------------------
def _attn_apply_kernel(x_ref, wt_ref, bt_ref, a_ref, bw_ref, scale_ref,
                       shift_ref, o_ref, *, compute_dtype, residual):
    cd = compute_dtype
    x = x_ref[0]                                                 # (C, tL) f32
    xc = x.astype(cd)
    th = (jnp.dot(wt_ref[...], xc, preferred_element_type=jnp.float32)
          + bt_ref[...]).astype(cd)                              # (Co_p, tL)
    z = jnp.dot(a_ref[0], th,
                preferred_element_type=jnp.float32) + bw_ref[...]   # (C, tL)
    out = z * scale_ref[...] + shift_ref[...]
    if residual:
        out = out + x
    o_ref[0] = out


def attention_forward(x, params, *, generate=True, eps=1e-5,
                      compute_dtype=jnp.bfloat16, l_tile_target=1024):
    """x: (B, C, L) float32 -> (B, C, L) float32 (PyTorch training-mode BN)."""
    B, C, L = x.shape
    Co = params["wg"].shape[0]
    # Pad Co so in-kernel slices / matmuls stay tile-aligned (16 covers both
    # bf16 (16,128) and f32 (8,128) layouts). Padded rows/cols are zero.
    Co_p = _round_up(Co, 16)

    pad_w = lambda w: jnp.pad(w, ((0, Co_p - Co), (0, 0)))           # (Co_p, C)
    pad_b = lambda b: jnp.pad(b, (0, Co_p - Co))[:, None]            # (Co_p, 1)

    wg_p, wt_p, wp_p = pad_w(params["wg"]), pad_w(params["wt"]), pad_w(params["wp"])
    bg_p, bt_p, bp_p = pad_b(params["bg"]), pad_b(params["bt"]), pad_b(params["bp"])
    ww_p = jnp.pad(params["ww"], ((0, 0), (0, Co_p - Co)))           # (C, Co_p)
    bw2 = params["bw"][:, None].astype(jnp.float32)                  # (C, 1)

    wproj_c = jnp.concatenate([wg_p, wt_p, wp_p], axis=0).astype(compute_dtype)
    bproj = jnp.concatenate([bg_p, bt_p, bp_p], axis=0).astype(jnp.float32)
    wt_c = wt_p.astype(compute_dtype)
    bt2 = bt_p.astype(jnp.float32)

    tL = _choose_l_tile(L, l_tile_target)
    nL = L // tL

    x_spec = pl.BlockSpec((1, C, tL), lambda b, l: (b, 0, l))
    full = lambda shape: pl.BlockSpec(shape, lambda b, l: (0,) * len(shape))
    per_b = lambda shape: pl.BlockSpec((1,) + shape, lambda b, l: (b, 0, 0))

    # ------------------------- kernel 1: statistics -------------------------
    k1 = functools.partial(_attn_stats_kernel, co_p=Co_p,
                           compute_dtype=compute_dtype)
    k1_cost = pl.CostEstimate(
        flops=int(2 * B * L * (3 * Co_p * C + 2 * Co_p * Co_p)),
        transcendentals=0,
        bytes_accessed=int(B * C * L * 4 + B * (2 * Co_p * Co_p + Co_p) * 4))
    m_raw, gram, s = pl.pallas_call(
        k1,
        out_shape=(jax.ShapeDtypeStruct((B, Co_p, Co_p), jnp.float32),
                   jax.ShapeDtypeStruct((B, Co_p, Co_p), jnp.float32),
                   jax.ShapeDtypeStruct((B, Co_p, 1), jnp.float32)),
        grid_spec=pltpu.PrefetchScalarGridSpec(
            num_scalar_prefetch=0,
            grid=(B, nL),
            in_specs=[x_spec, full((3 * Co_p, C)), full((3 * Co_p, 1))],
            out_specs=(per_b((Co_p, Co_p)), per_b((Co_p, Co_p)),
                       per_b((Co_p, 1))),
        ),
        compiler_params=pltpu.CompilerParams(
            dimension_semantics=("parallel", "arbitrary"),
            vmem_limit_bytes=_VMEM_LIMIT_BYTES),
        cost_estimate=k1_cost,
    )(x, wproj_c, bproj)

    # -------- tiny wrapper math: A, analytic BN stats, scale/shift ----------
    m_mat = m_raw * (1.0 / L)                                        # (B,Cp,Cp)
    a_mat = jnp.einsum("cm,bmn->bcn", ww_p.astype(jnp.float32), m_mat)  # (B,C,Cp)
    # u = A @ theta (so z = u + bw);  bw-centered one-pass stats.
    u_sum = jnp.einsum("bcn,bn->bc", a_mat, s[:, :, 0])              # (B, C)
    u_sq = jnp.einsum("bcm,bmn,bcn->bc", a_mat, gram, a_mat)         # (B, C)
    n = B * L
    mean_u = jnp.sum(u_sum, axis=0) / n
    e_u2 = jnp.sum(u_sq, axis=0) / n
    # TODO(synk): one-pass var (E[u^2]-mean^2) can cancel when |mean|>>std even
    #             after bw-centering; clamp keeps it non-negative.
    var = jnp.maximum(e_u2 - mean_u * mean_u, 0.0)
    mean_z = mean_u + params["bw"]
    scale = params["bn_gamma"] * jax.lax.rsqrt(var + eps)            # (C,)
    shift = params["bn_beta"] - mean_z * scale                       # (C,)

    scale2 = scale[:, None].astype(jnp.float32)
    shift2 = shift[:, None].astype(jnp.float32)
    a_cd = a_mat.astype(compute_dtype)                               # (B,C,Cp)

    # ------------------ kernel 2: BN apply (+ residual) ---------------------
    k2 = functools.partial(_attn_apply_kernel, compute_dtype=compute_dtype,
                           residual=generate)
    k2_cost = pl.CostEstimate(
        flops=int(2 * B * L * (Co_p * C + C * Co_p) + 4 * B * C * L),
        transcendentals=0,
        bytes_accessed=int(2 * B * C * L * 4))
    out = pl.pallas_call(
        k2,
        out_shape=jax.ShapeDtypeStruct((B, C, L), jnp.float32),
        grid_spec=pltpu.PrefetchScalarGridSpec(
            num_scalar_prefetch=0,
            grid=(B, nL),
            in_specs=[x_spec,
                      full((Co_p, C)), full((Co_p, 1)),
                      per_b((C, Co_p)),
                      full((C, 1)), full((C, 1)), full((C, 1))],
            out_specs=x_spec,
        ),
        compiler_params=pltpu.CompilerParams(
            dimension_semantics=("parallel", "parallel"),
            vmem_limit_bytes=_VMEM_LIMIT_BYTES),
        cost_estimate=k2_cost,
    )(x, wt_c, bt2, a_cd, bw2, scale2, shift2)
    return out


# ----------------------------------------------------------------------------
# Parameter construction + pure-JAX reference
# ----------------------------------------------------------------------------
def init_params(key, in_channels):
    """Mirrors the PyTorch module init (BN gamma/beta = 0, theta/phi std 0.02)."""
    Co = in_channels // 2 if in_channels > 1 else 1
    ks = jax.random.split(key, 6)
    p = {
        "wg": 0.1 * jax.random.normal(ks[0], (Co, in_channels), jnp.float32),
        "bg": 0.1 * jax.random.normal(ks[1], (Co,), jnp.float32),
        "wt": 0.02 * jax.random.normal(ks[2], (Co, in_channels), jnp.float32),
        "bt": jnp.zeros((Co,), jnp.float32),
        "wp": 0.02 * jax.random.normal(ks[3], (Co, in_channels), jnp.float32),
        "bp": jnp.zeros((Co,), jnp.float32),
        "ww": 0.1 * jax.random.normal(ks[4], (in_channels, Co), jnp.float32),
        "bw": 0.1 * jax.random.normal(ks[5], (in_channels,), jnp.float32),
        "bn_gamma": jnp.zeros((in_channels,), jnp.float32),
        "bn_beta": jnp.zeros((in_channels,), jnp.float32),
    }
    return p, Co


def make_test_params(in_channels):
    """Deterministic, well-conditioned params exercising the full path."""
    assert in_channels == 4
    p = {
        "wg": jnp.array([[1., 0., 0., 0.], [0., 1., 0., 0.]], jnp.float32),
        "bg": jnp.array([0.1, -0.1], jnp.float32),
        "wt": 0.5 * jnp.array([[1., 0., -1., 0.], [0., 1., 0., -1.]], jnp.float32),
        "bt": jnp.array([0.1, -0.1], jnp.float32),
        "wp": jnp.array([[1., 0., 0., 0.], [0., 1., 0., 0.]], jnp.float32),
        "bp": jnp.array([0.05, 0.05], jnp.float32),
        "ww": jnp.array([[1., 0.], [0., 1.], [1., 1.], [1., -1.]], jnp.float32),
        "bw": jnp.array([0.1, -0.2, 0.3, -0.4], jnp.float32),
        "bn_gamma": jnp.array([1.0, 0.9, 1.1, 1.2], jnp.float32),
        "bn_beta": jnp.array([0.2, -0.1, 0.0, 0.3], jnp.float32),
    }
    return p


def reference_forward(x, p, generate=True, eps=1e-5):
    """Pure-JAX f32 reference of the PyTorch forward (training-mode BN),
    using the ORIGINAL association (explicit L x L f matrix)."""
    B, C, L = x.shape
    conv = lambda w, b, t: jnp.einsum("oc,bcl->bol", w, t) + b[None, :, None]
    g_x = jnp.transpose(conv(p["wg"], p["bg"], x), (0, 2, 1))        # (B,L,Co)
    th = jnp.transpose(conv(p["wt"], p["bt"], x), (0, 2, 1))         # (B,L,Co)
    ph = conv(p["wp"], p["bp"], x)                                   # (B,Co,L)
    f = jnp.einsum("blc,bcm->blm", th, ph) / L
    y = jnp.einsum("blm,bmc->blc", f, g_x)                           # (B,L,Co)
    y = jnp.transpose(y, (0, 2, 1))                                  # (B,Co,L)
    z = jnp.einsum("oc,bcl->bol", p["ww"], y) + p["bw"][None, :, None]
    mean = jnp.mean(z, axis=(0, 2))
    var = jnp.mean((z - mean[None, :, None]) ** 2, axis=(0, 2))      # biased
    zhat = (z - mean[None, :, None]) * jax.lax.rsqrt(var + eps)[None, :, None]
    wy = p["bn_gamma"][None, :, None] * zhat + p["bn_beta"][None, :, None]
    return wy + x if generate else wy


if __name__ == "__main__":
    key = jax.random.PRNGKey(0)
    kx, kp = jax.random.split(key)

    B, C_in, L = 2, 4, 16
    x = jax.random.normal(kx, (B, C_in, L), jnp.float32)   # layout: (B, C, L)

    # --- Test A: PyTorch-faithful init (BN gamma=0 => W_y == 0, out == x). ---
    params, Co = init_params(kp, C_in)
    out_a = jax.block_until_ready(attention_forward(x, params, generate=True))
    ref_a = reference_forward(x, params, generate=True)
    assert out_a.shape == (B, C_in, L)
    assert jnp.allclose(out_a, ref_a, atol=1e-4, rtol=1e-4), "Test A mismatch"

    # --- Test B: non-trivial params exercising attention + BN + residual. ---
    params_b = make_test_params(C_in)
    ref_b = reference_forward(x, params_b, generate=True)

    # Exact-arithmetic (f32 MXU inputs) path: tight tolerance.
    out_f32 = jax.block_until_ready(
        attention_forward(x, params_b, generate=True,
                          compute_dtype=jnp.float32))
    assert jnp.allclose(out_f32, ref_b, atol=1e-4, rtol=1e-4), "f32 mismatch"

    # Default bf16-MXU path: loose tolerance (BN's 1/std rescaling amplifies
    # bf16 input rounding; the tight check is the f32 path above).
    out_bf16 = jax.block_until_ready(
        attention_forward(x, params_b, generate=True))
    assert jnp.all(jnp.isfinite(out_bf16))
    assert jnp.allclose(out_bf16, ref_b, atol=0.2, rtol=0.2), "bf16 mismatch"

    # generate=False path (no residual add; x still read to rebuild theta).
    out_ng = jax.block_until_ready(
        attention_forward(x, params_b, generate=False,
                          compute_dtype=jnp.float32))
    ref_ng = reference_forward(x, params_b, generate=False)
    assert jnp.allclose(out_ng, ref_ng, atol=1e-4, rtol=1e-4), "no-gen mismatch"

    print("KERNEL_OK")
</pallas_src>

<mosaic_0001>
module attributes {stable_mosaic.version = 11 : i64} {
  func.func @_attn_stats_kernel(%arg0: i32, %arg1: i32, %arg2: memref<1x4x16xf32, #tpu.memory_space<vmem>>, %arg3: memref<48x4xbf16, #tpu.memory_space<vmem>>, %arg4: memref<48x1xf32, #tpu.memory_space<vmem>>, %arg5: memref<1x16x16xf32, #tpu.memory_space<vmem>>, %arg6: memref<1x16x16xf32, #tpu.memory_space<vmem>>, %arg7: memref<1x16x1xf32, #tpu.memory_space<vmem>>) attributes {dimension_semantics = [#tpu.dimension_semantics<parallel>, #tpu.dimension_semantics<arbitrary>], iteration_bounds = array<i64: 2, 1>, scalar_prefetch = 0 : i64, scratch_operands = 0 : i64, tpu.core_type = #tpu.core_type<tc>, window_params = [{transform_indices = @transform_0, window_bounds = array<i64: 1, 4, 16>}, {pipeline_mode = #tpu.pipeline_mode<synchronous>, transform_indices = @transform_1, window_bounds = array<i64: 48, 4>}, {pipeline_mode = #tpu.pipeline_mode<synchronous>, transform_indices = @transform_2, window_bounds = array<i64: 48, 1>}, {transform_indices = @transform_3, window_bounds = array<i64: 1, 16, 16>}, {transform_indices = @transform_4, window_bounds = array<i64: 1, 16, 16>}, {transform_indices = @transform_5, window_bounds = array<i64: 1, 16, 1>}]} {
    %c0_i32 = arith.constant 0 : i32
    %0 = arith.cmpi eq, %arg1, %c0_i32 : i32
    %1 = arith.extui %0 : i1 to i32
    %c0_i32_0 = arith.constant 0 : i32
    %2 = arith.cmpi ne, %1, %c0_i32_0 : i32
    scf.if %2 {
      %cst_28 = arith.constant 0.000000e+00 : f32
      %38 = vector.broadcast %cst_28 : f32 to vector<1x16x16xf32>
      %c0_29 = arith.constant 0 : index
      %c0_30 = arith.constant 0 : index
      %c0_31 = arith.constant 0 : index
      %39 = vector.load %arg5[%c0_29, %c0_30, %c0_31] : memref<1x16x16xf32, #tpu.memory_space<vmem>>, vector<1x16x16xf32>
      tpu.vector_store %arg5[%c0_29, %c0_30, %c0_31], %38 {strides = array<i32>} : memref<1x16x16xf32, #tpu.memory_space<vmem>>, vector<1x16x16xf32>,
      %cst_32 = arith.constant 0.000000e+00 : f32
      %40 = vector.broadcast %cst_32 : f32 to vector<1x16x16xf32>
      %c0_33 = arith.constant 0 : index
      %c0_34 = arith.constant 0 : index
      %c0_35 = arith.constant 0 : index
      %41 = vector.load %arg6[%c0_33, %c0_34, %c0_35] : memref<1x16x16xf32, #tpu.memory_space<vmem>>, vector<1x16x16xf32>
      tpu.vector_store %arg6[%c0_33, %c0_34, %c0_35], %40 {strides = array<i32>} : memref<1x16x16xf32, #tpu.memory_space<vmem>>, vector<1x16x16xf32>,
      %cst_36 = arith.constant 0.000000e+00 : f32
      %42 = vector.broadcast %cst_36 : f32 to vector<1x16x1xf32>
      %c0_37 = arith.constant 0 : index
      %c0_38 = arith.constant 0 : index
      %c0_39 = arith.constant 0 : index
      %43 = vector.load %arg7[%c0_37, %c0_38, %c0_39] : memref<1x16x1xf32, #tpu.memory_space<vmem>>, vector<1x16x1xf32>
      tpu.vector_store %arg7[%c0_37, %c0_38, %c0_39], %42 {strides = array<i32>} : memref<1x16x1xf32, #tpu.memory_space<vmem>>, vector<1x16x1xf32>,
    } else {
    }
    %c0 = arith.constant 0 : index
    %c0_1 = arith.constant 0 : index
    %c0_2 = arith.constant 0 : index
    %3 = vector.load %arg2[%c0, %c0_1, %c0_2] : memref<1x4x16xf32, #tpu.memory_space<vmem>>, vector<1x4x16xf32>
    %4 = vector.shape_cast %3 : vector<1x4x16xf32> to vector<4x16xf32>
    %5 = arith.truncf %4 : vector<4x16xf32> to vector<4x16xbf16>
    %c0_3 = arith.constant 0 : index
    %c0_4 = arith.constant 0 : index
    %6 = vector.load %arg3[%c0_3, %c0_4] : memref<48x4xbf16, #tpu.memory_space<vmem>>, vector<48x4xbf16>
    %cst = arith.constant dense<0.000000e+00> : vector<48x16xf32>
    %7 = tpu.matmul %6, %5, %cst {dimension_numbers = #tpu.dot_dimension_numbers<[1], [0], [0], [1], [0, 0, 1, 1], [], []>} : vector<48x4xbf16>, vector<4x16xbf16>, vector<48x16xf32> -> vector<48x16xf32>
    %c0_5 = arith.constant 0 : index
    %c0_6 = arith.constant 0 : index
    %8 = vector.load %arg4[%c0_5, %c0_6] : memref<48x1xf32, #tpu.memory_space<vmem>>, vector<48x1xf32>
    %9 = vector.broadcast %8 : vector<48x1xf32> to vector<48x16xf32>
    %10 = arith.addf %7, %9 : vector<48x16xf32>
    %11 = arith.truncf %10 : vector<48x16xf32> to vector<48x16xbf16>
    %12 = vector.extract_strided_slice %11 {offsets = [0, 0], sizes = [16, 16], strides = [1, 1]} : vector<48x16xbf16> to vector<16x16xbf16>
    %13 = vector.extract_strided_slice %11 {offsets = [16, 0], sizes = [16, 16], strides = [1, 1]} : vector<48x16xbf16> to vector<16x16xbf16>
    %14 = vector.extract_strided_slice %11 {offsets = [32, 0], sizes = [16, 16], strides = [1, 1]} : vector<48x16xbf16> to vector<16x16xbf16>
    %c0_7 = arith.constant 0 : index
    %c0_8 = arith.constant 0 : index
    %c0_9 = arith.constant 0 : index
    %15 = vector.load %arg5[%c0_7, %c0_8, %c0_9] : memref<1x16x16xf32, #tpu.memory_space<vmem>>, vector<1x16x16xf32>
    %16 = vector.shape_cast %15 : vector<1x16x16xf32> to vector<16x16xf32>
    %cst_10 = arith.constant dense<0.000000e+00> : vector<16x16xf32>
    %17 = tpu.matmul %12, %14, %cst_10 {dimension_numbers = #tpu.dot_dimension_numbers<[1], [1], [0], [0], [0, 0, 1, 0], [], []>} : vector<16x16xbf16>, vector<16x16xbf16>, vector<16x16xf32> -> vector<16x16xf32>
    %18 = arith.addf %16, %17 : vector<16x16xf32>
    %c0_11 = arith.constant 0 : index
    %c0_12 = arith.constant 0 : index
    %c0_13 = arith.constant 0 : index
    %19 = vector.load %arg5[%c0_11, %c0_12, %c0_13] : memref<1x16x16xf32, #tpu.memory_space<vmem>>, vector<1x16x16xf32>
    %20 = vector.shape_cast %19 : vector<1x16x16xf32> to vector<16x16xf32>
    %21 = vector.shape_cast %18 : vector<16x16xf32> to vector<1x16x16xf32>
    tpu.vector_store %arg5[%c0_11, %c0_12, %c0_13], %21 {strides = array<i32>} : memref<1x16x16xf32, #tpu.memory_space<vmem>>, vector<1x16x16xf32>,
    %c0_14 = arith.constant 0 : index
    %c0_15 = arith.constant 0 : index
    %c0_16 = arith.constant 0 : index
    %22 = vector.load %arg6[%c0_14, %c0_15, %c0_16] : memref<1x16x16xf32, #tpu.memory_space<vmem>>, vector<1x16x16xf32>
    %23 = vector.shape_cast %22 : vector<1x16x16xf32> to vector<16x16xf32>
    %cst_17 = arith.constant dense<0.000000e+00> : vector<16x16xf32>
    %24 = tpu.matmul %13, %13, %cst_17 {dimension_numbers = #tpu.dot_dimension_numbers<[1], [1], [0], [0], [0, 0, 1, 0], [], []>} : vector<16x16xbf16>, vector<16x16xbf16>, vector<16x16xf32> -> vector<16x16xf32>
    %25 = arith.addf %23, %24 : vector<16x16xf32>
    %c0_18 = arith.constant 0 : index
    %c0_19 = arith.constant 0 : index
    %c0_20 = arith.constant 0 : index
    %26 = vector.load %arg6[%c0_18, %c0_19, %c0_20] : memref<1x16x16xf32, #tpu.memory_space<vmem>>, vector<1x16x16xf32>
    %27 = vector.shape_cast %26 : vector<1x16x16xf32> to vector<16x16xf32>
    %28 = vector.shape_cast %25 : vector<16x16xf32> to vector<1x16x16xf32>
    tpu.vector_store %arg6[%c0_18, %c0_19, %c0_20], %28 {strides = array<i32>} : memref<1x16x16xf32, #tpu.memory_space<vmem>>, vector<1x16x16xf32>,
    %c0_21 = arith.constant 0 : index
    %c0_22 = arith.constant 0 : index
    %c0_23 = arith.constant 0 : index
    %29 = vector.load %arg7[%c0_21, %c0_22, %c0_23] : memref<1x16x1xf32, #tpu.memory_space<vmem>>, vector<1x16x1xf32>
    %30 = vector.shape_cast %29 : vector<1x16x1xf32> to vector<16x1xf32>
    %31 = arith.extf %13 : vector<16x16xbf16> to vector<16x16xf32>
    %cst_24 = arith.constant dense<0.000000e+00> : vector<16xf32>
    %32 = vector.multi_reduction <add>, %31, %cst_24 [1] : vector<16x16xf32> to vector<16xf32>
    %33 = vector.shape_cast %32 : vector<16xf32> to vector<16x1xf32>
    %34 = arith.addf %30, %33 : vector<16x1xf32>
    %c0_25 = arith.constant 0 : index
    %c0_26 = arith.constant 0 : index
    %c0_27 = arith.constant 0 : index
    %35 = vector.load %arg7[%c0_25, %c0_26, %c0_27] : memref<1x16x1xf32, #tpu.memory_space<vmem>>, vector<1x16x1xf32>
    %36 = vector.shape_cast %35 : vector<1x16x1xf32> to vector<16x1xf32>
    %37 = vector.shape_cast %34 : vector<16x1xf32> to vector<1x16x1xf32>
    tpu.vector_store %arg7[%c0_25, %c0_26, %c0_27], %37 {strides = array<i32>} : memref<1x16x1xf32, #tpu.memory_space<vmem>>, vector<1x16x1xf32>,
    return
  }
  func.func @transform_0(%arg0: i32, %arg1: i32) -> (i32, i32, i32) {
    %c0_i32 = arith.constant 0 : i32
    %c0_i32_0 = arith.constant 0 : i32
    return %arg0, %c0_i32, %arg1 : i32, i32, i32
  }
  func.func @transform_1(%arg0: i32, %arg1: i32) -> (i32, i32) {
    %c0_i32 = arith.constant 0 : i32
    %c0_i32_0 = arith.constant 0 : i32
    %c0_i32_1 = arith.constant 0 : i32
    return %c0_i32, %c0_i32_0 : i32, i32
  }
  func.func @transform_2(%arg0: i32, %arg1: i32) -> (i32, i32) {
    %c0_i32 = arith.constant 0 : i32
    %c0_i32_0 = arith.constant 0 : i32
    %c0_i32_1 = arith.constant 0 : i32
    return %c0_i32, %c0_i32_0 : i32, i32
  }
  func.func @transform_3(%arg0: i32, %arg1: i32) -> (i32, i32, i32) {
    %c0_i32 = arith.constant 0 : i32
    %c0_i32_0 = arith.constant 0 : i32
    %c0_i32_1 = arith.constant 0 : i32
    return %arg0, %c0_i32, %c0_i32_0 : i32, i32, i32
  }
  func.func @transform_4(%arg0: i32, %arg1: i32) -> (i32, i32, i32) {
    %c0_i32 = arith.constant 0 : i32
    %c0_i32_0 = arith.constant 0 : i32
    %c0_i32_1 = arith.constant 0 : i32
    return %arg0, %c0_i32, %c0_i32_0 : i32, i32, i32
  }
  func.func @transform_5(%arg0: i32, %arg1: i32) -> (i32, i32, i32) {
    %c0_i32 = arith.constant 0 : i32
    %c0_i32_0 = arith.constant 0 : i32
    %c0_i32_1 = arith.constant 0 : i32
    return %arg0, %c0_i32, %c0_i32_0 : i32, i32, i32
  }
}

</mosaic_0001>

<bundles_post_ra>
// kernel: tpu_custom_call.1
= control target key start
LH: loop header
LB: loop body
LE: loop exit
PB: predicated region body
PF: predicated region fallthrough
CT: control target
= control target key end

     0   :  { %11 = vsyncpa [#allocation3], 0  ;;  %s1233_s0 = inlined_call_operand.vmem [shape: f32[2,4,16], index: 0, kind: input, shape index: {}]   ;;  %s1234_s1 = inlined_call_operand.vmem [shape: bf16[48,4], index: 1, kind: input, shape index: {}]   ;;  %s1235_s2 = inlined_call_operand.vmem [shape: f32[48,1], index: 2, kind: input, shape index: {}]   ;;  %s1236_s3 = inlined_call_operand.hbm [shape: f32[2,16,16], index: 3, kind: output, shape index: {0}]   ;;  %s1237_s4 = inlined_call_operand.hbm [shape: f32[2,16,16], index: 4, kind: output, shape index: {1}]   ;;  %s1238_s5 = inlined_call_operand.vmem [shape: f32[2,16,1], index: 5, kind: output, shape index: {2}]  }
   0x1   :  { %13 = vsyncpa [#allocation3 + $0x1], 0 }
   0x2   :  { %14 = vsyncpa [#allocation5], 0 }
   0x3   :  { %16 = vsyncpa [#allocation5 + $0x1], 0  ;;  %s986_s18 = smov 0   ;;  %s988_s19 = smov 0  }
   0x4   :  { %s990_s20 = smov 0   ;;  %s992_s21 = smov 0  }
   0x5   :  { %s994_s22 = smov 0   ;;  %s996_s23 = smov 0  }
   0x6 LB: > { %s704_s24 = sadd.s32 4294967295, %s947_s23   ;;  %s705_s25 = sadd.s32 4294967294, %s947_s23   ;;  %s947_s23 = sphi %s996_s23, %s22_s23   ;;  %s943_s22 = sphi %s994_s22, %s1245_s22   ;;  %s939_s21 = sphi %s992_s21, %s1244_s21   ;;  %s935_s20 = sphi %s990_s20, %s1243_s20   ;;  %s931_s19 = sphi %s988_s19, %s1242_s19   ;;  %s927_s18 = sphi %s986_s18, %s1241_s18  }
   0x7   : > { %s34_s26 = sadd.s32 1, %s943_s22  ;;  %s111_s27 = sadd.s32 1, %s935_s20 }
   0x8   : > { %p36_p0 = scmp.ge.s32.totalorder %s34_s26, 2  ;;  %p121_p1 = scmp.ne.s32.totalorder %s935_s20, %s931_s19 }
   0x9   : > { %p122_p2 = scmp.eq.s32.totalorder %s704_s24, 1  ;;  %p127_p3 = scmp.ne.s32.totalorder %s931_s19, %s927_s18 }
   0xa   : > { %s1247_s26 = smov (%p36_p0, %s34_s26), 0  ;;  %p128_p5 = scmp.eq.s32.totalorder %s705_s25, 1 }
   0xb   : > { %p1026_p4 = por %p122_p2, %p121_p1  ;;  %s108_s29 = ssub.s32 %s943_s22, %s1247_s26 }
   0xc   : > { %p708_p6 = scmp.ge.s32.totalorder %s947_s23, 1  ;;  %p109_p7 = scmp.eq.s32.totalorder %s108_s29, 0 }
   0xd   : > { %p1033_p8 = por %p128_p5, %p127_p3  ;;  %p214_p9 = scmp.lt.s32.totalorder %s947_s23, 3 }
   0xe   : > { %s1039_s6 = scalar_select %p109_p7, %s935_s20, %s111_s27  }
   0xf   : > { %p215_p10 = pnand %p708_p6, %p214_p9 }
  0x10   : > { %p254_p11 = scmp.lt.s32.totalorder (!%p215_p10), %s939_s21, 1  ;;  %v949_v0 = vmov (!%p215_p10), 0.0   ;;  %vm950_vm0 = vmmov (!%p215_p10), 0   ;;  %v287_v1 = vld [vmem:[%s1235_s2] sm:$0xff] (!%p215_p10)  ;;  %v951_v2 = vmov (!%p215_p10), 0   ;;  %vm348_vm1 = vcmask (!%p215_p10), 1041408  }
  0x11   : > { %218 = sbr.rel (%p215_p10) target bundleno = 532 (0x214), region = 32  ;;  %741 = vmatprep.subr.bf16.mxu0 (!%p215_p10), %v949_v0  ;;  %743 = vmatprep.mubr.msk.bf16.mxu0 (!%p215_p10), %vm950_vm0, %v949_v0  ;;  %v291_v3 = vld [vmem:[%s1235_s2 + $0x20] sm:$0xff] (!%p215_p10)  ;;  %v288_v5 = vld [vmem:[%s1235_s2 + $0x8] sm:$0xff] (!%p215_p10)  ;;  %vm338_vm2 = vcmask (!%p215_p10), 31744   ;;  %v289_v10 = vld [vmem:[%s1235_s2 + $0x10] sm:$0xff] (!%p215_p10)  ;;  %vm276_vm3 = vcmask (!%p215_p10), 7168  }
  0x12   : > { %755 = vmatprep.subr.bf16.mxu1 (!%p215_p10), %v949_v0  ;;  %757 = vmatprep.mubr.msk.bf16.mxu1 (!%p215_p10), %vm950_vm0, %v949_v0  ;;  %v292_v6 = vld [vmem:[%s1235_s2 + $0x28] sm:$0xff] (!%p215_p10)  ;;  %v834_v9 = vld [vmem:[%s1234_s1] sm:$0xff] (!%p215_p10)   ;;  %v290_v11 = vld [vmem:[%s1235_s2 + $0x18] sm:$0xff] (!%p215_p10)  ;;  %vm271_vm4 = vcmask (!%p215_p10), 130048   ;;  %s731_s9 = sshll.u32 (!%p215_p10), %s939_s21, 8 }
  0x13   : > { %833 = vset.pattern.permute.xlu1 (!%p215_p10), %v951_v2  ;;  %832 = vset.pattern.permute.xlu0 (!%p215_p10), %v951_v2  ;;  %v835_v12 = vld [vmem:[%s1234_s1 + $0x8] sm:$0xff] (!%p215_p10)   ;;  %v836_v13 = vld [vmem:[%s1234_s1 + $0x10] sm:$0xff] (!%p215_p10)   ;;  %s1135_s13 = scalar_lea.hbm (!%p215_p10), %s1236_s3, %s731_s9 }
  0x14   : > { %295 = vperm.xlu1 (!%p215_p10), %833, %v287_v1   ;;  %315 = vperm.xlu0 (!%p215_p10), %832, %v291_v3  }
  0x18   : > { %s1046_s7 = scalar_select %p254_p11, %s939_s21, 1  ;;  %300 = vperm.xlu1 %833, %v288_v5   ;;  %320 = vperm.xlu0 %832, %v292_v6  }
  0x1a   : > { %s711_s10 = sshll.u32 %s1046_s7, 2  ;;  %s730_s16 = sshll.u32 %s1046_s7, 4 }
  0x1b   : > { %s260_s15 = scalar_lea.vmem %s1233_s0, %s711_s10  ;;  %s1090_s25 = scalar_lea.vmem %s1238_s5, %s730_s16 }
  0x1c   : > { %v279_v4 = vld [vmem:[%s260_s15] sm:$0xf]  ;;  %305 = vperm.xlu0 %832, %v289_v10   ;;  %310 = vperm.xlu1 %833, %v290_v11   ;;  %278 = vst.msk [vmem:[%s1090_s25 + $0x8] sm:$0xff] %vm276_vm3, %v949_v0  ;;  %277 = vst.msk [vmem:[%s1090_s25] sm:$0xff] %vm276_vm3, %v949_v0  ;;  %s1107_s7 = sand.u32 1, %s931_s19   ;;  %s952_s16 = smov [#allocation2]  }
  0x1d   : > { %v280_v7 = vpack.c.bf16 %v279_v4, %v279_v4  ;;  %s709_s27 = sshll.u32 %s1107_s7, 4  ;;  %s532_s14 = scalar_lea.sflag [#allocation3], %s1107_s7 }
  0x1e   : > { %s239_s29 = scalar_lea.vmem [#allocation2], %s709_s27  ;;  %s1115_s8 = scalar_lea.vmem [#allocation4], %s709_s27 }
  0x1f   : > { %v350_v8 = vsel %vm348_vm1, %v280_v7, 0  ;;  %272 = vst.msk [vmem:[%s239_s29] sm:$0xff] %vm271_vm4, %v949_v0  ;;  %273 = vst.msk [vmem:[%s239_s29 + $0x8] sm:$0xff] %vm271_vm4, %v949_v0  ;;  %s555_s10 = sshll.u32 %s239_s29, 4  ;;  %s841_s17 = sshll.u32 %s952_s16, 4  ;;  %s1137_s10 = int_to_ptr.vmem [resolvable:$true] %s555_s10  ;;  %s842_s17 = int_to_ptr.vmem [resolvable:$false] %s841_s17 }
  0x20   : > { %742 = vmatpush3.bf16.msra.mxu0 %v350_v8  ;;  %274 = vst.msk [vmem:[%s1115_s8] sm:$0xff] %vm271_vm4, %v949_v0  ;;  %275 = vst.msk [vmem:[%s1115_s8 + $0x8] sm:$0xff] %vm271_vm4, %v949_v0  ;;  %s837_s15 = scalar_lea.vmem %s1137_s10, 256  ;;  %s843_s24 = scalar_lea.vmem %s842_s17, 512 }
  0x21   : > { %p838_p12 = scmp.ne.s32.totalorder %s1137_s10, %s837_s15  ;;  %p844_p1 = scmp.lt.s32.totalorder %s1137_s10, %s842_s17 }
  0x22   : > { %p845_p2 = scmp.lt.s32.totalorder %s843_s24, %s837_s15 }
  0x23   : > { %744 = vmatmul.mubr.msk.bf16.vlgmr.msra.gmra.mrb[0].mxu0 %vm338_vm2, %v834_v9  ;;  %v517_v47 = vld [vmem:[%s1090_s25 + $0x8] sm:$0xff]  ;;  %v516_v48 = vld [vmem:[%s1090_s25] sm:$0xff]  ;;  %p839_p13 = pnand %p838_p12, %p1026_p4 }
  0x24   : > { %747 = vmatprep.mubr.msk.bf16.mxu0 %vm950_vm0, %v949_v0  ;;  %p846_p3 = por %p845_p2, %p844_p1 }
  0x25   : > { %p840_p0 = pneg %p839_p13 }
  0x26   : > { %v412_v53 = vld [vmem:[%s239_s29] sm:$0xff]  ;;  %v413_v55 = vld [vmem:[%s239_s29 + $0x8] sm:$0xff] }
  0x27   : > { %v466_v61 = vld [vmem:[%s1115_s8] sm:$0xff]  ;;  %p847_p5 = pnand %p846_p3, %p840_p0 }
  0x2b   : > { %748 = vmatmul.mubr.msk.bf16.gmra.mrb[4].mxu0 %vm338_vm2, %v835_v12 }
  0x2c   : > { %751 = vmatprep.mubr.msk.bf16.mxu0 %vm950_vm0, %v949_v0 }
  0x33   : > { %752 = vmatmul.mubr.msk.bf16.gmra.mrb[8].mxu0 %vm338_vm2, %v836_v13 }
  0x93   : > { %v296_v14 = vpop.permute.xlu1 %295  ;;  %v316_v15 = vpop.permute.xlu0 %315 }
  0x97   : > { %v301_v17 = vpop.permute.xlu1 %300  ;;  %v321_v19 = vpop.permute.xlu0 %320 }
  0x9b   : > { %v306_v25 = vpop.permute.xlu0 %305  ;;  %v311_v27 = vpop.permute.xlu1 %310 }
  0xf6   : > { %v386_v16 = vpop.f32.mrb[0].mxu0 }
  0xf7   : > { %v745_v18 = vpop.f32.mrb[1].mxu0  ;;  %v387_v21 = vadd.f32 %v386_v16, %v296_v14 }
  0xf8   : > { %v389_v20 = vpop.f32.mrb[2].mxu0 }
  0xf9   : > { %v390_v22 = vadd.f32 %v389_v20, %v301_v17  ;;  %v746_v23 = vpop.f32.mrb[3].mxu0 }
  0xfb   : > { %v409_v24 = vpack.c.bf16 %v390_v22, %v387_v21 }
  0xfe   : > { %v394_v26 = vpop.f32.mrb[4].mxu0 }
  0xff   : > { %v749_v28 = vpop.f32.mrb[5].mxu0  ;;  %v395_v30 = vadd.f32 %v394_v26, %v306_v25 }
 0x100   : > { %v397_v29 = vpop.f32.mrb[6].mxu0 }
 0x101   : > { %v398_v31 = vadd.f32 %v397_v29, %v311_v27  ;;  %v750_v32 = vpop.f32.mrb[7].mxu0 }
 0x103   : > { %v410_v33 = vpack.c.bf16 %v398_v31, %v395_v30 }
 0x105   : > { %v519_v34 = vunpack.c.h.bf16 %v410_v33  ;;  %v518_v35 = vunpack.c.l.bf16 %v410_v33  ;;  %v469_v46 = vsel %vm271_vm4, %v410_v33, 0 }
 0x106   : > { %v402_v36 = vpop.f32.mrb[8].mxu0 }
 0x107   : > { %v753_v37 = vpop.f32.mrb[9].mxu0  ;;  %v523_v38 = vsel %vm271_vm4, %v519_v34, 0.0  ;;  %v520_v39 = vsel %vm271_vm4, %v518_v35, 0.0  ;;  %v403_v41 = vadd.f32 %v402_v36, %v316_v15 }
 0x108   : > { %524 = vadd.xlane.f32.xlu1 %v523_v38  ;;  %521 = vadd.xlane.f32.xlu0 %v520_v39  ;;  %v405_v40 = vpop.f32.mrb[10].mxu0 }
 0x109   : > { %v406_v42 = vadd.f32 %v405_v40, %v321_v19  ;;  %v754_v43 = vpop.f32.mrb[11].mxu0 }
 0x10b   : > { %v411_v44 = vpack.c.bf16 %v406_v42, %v403_v41 }
 0x10d   : > { %v419_v45 = vsel %vm271_vm4, %v411_v44, 0 }
 0x10e   : > { %756 = vmatpush3.bf16.xpose.msra.mxu1 %v419_v45 }
 0x10f   : > { %761 = vmatprep.subr.bf16.mxu1 %v949_v0 }
 0x115   : > { %758 = vmatmul.mubr.msk.bf16.vlgmr.msra.gmra.mrb[0].mxu1 %vm271_vm4, %v409_v24 }
 0x116   : > { %762 = vmatpush3.bf16.xpose.msra.mxu1 %v469_v46  ;;  %763 = vmatprep.mubr.msk.bf16.mxu1 %vm950_vm0, %v949_v0 }
 0x11d   : > { %764 = vmatmul.mubr.msk.bf16.vlgmr.msra.gmra.mrb[4].mxu1 %vm271_vm4, %v410_v33 }
 0x195   : > { %v525_v49 = vpop.xlane.xlu1 %524  ;;  %v522_v50 = vpop.xlane.xlu0 %521 }
 0x196   : > { %v527_v51 = vadd.f32 %v525_v49, %v517_v47  ;;  %v526_v52 = vadd.f32 %v522_v50, %v516_v48 }
 0x198   : > { %530 = vst.msk [vmem:[%s1090_s25 + $0x8] sm:$0xff] %vm276_vm3, %v527_v51  ;;  %529 = vst.msk [vmem:[%s1090_s25] sm:$0xff] %vm276_vm3, %v526_v52 }
 0x1e8   : > { %v455_v54 = vpop.f32.mrb[0].mxu1 }
 0x1e9   : > { %v462_v56 = vadd.f32 %v455_v54, %v412_v53  ;;  %v759_v57 = vpop.f32.mrb[1].mxu1 }
 0x1ea   : > { %v458_v58 = vpop.f32.mrb[2].mxu1 }
 0x1eb   : > { %464 = vst.msk [vmem:[%s239_s29] sm:$0xff] %vm271_vm4, %v462_v56  ;;  %v463_v59 = vadd.f32 %v458_v58, %v413_v55  ;;  %v760_v60 = vpop.f32.mrb[3].mxu1 }
 0x1ed   : > { %465 = vst.msk [vmem:[%s239_s29 + $0x8] sm:$0xff] %vm271_vm4, %v463_v59 }
 0x1ee   : > { %850 = shalt.err (!%p847_p5)
}
 0x1ef   : > { %s851_s25 = scalar_lea.hbm %s1135_s13, 256  ;;  %s855_s11 = scalar_lea.hbm %s1236_s3, 512 }
 0x1f0   : > { %p852_p6 = scmp.ne.s32.totalorder %s1135_s13, %s851_s25  ;;  %p856_p10 = scmp.lt.u32.totalorder %s1135_s13, %s1236_s3 }
 0x1f1   : > { %p857_p11 = scmp.lt.u32.totalorder %s855_s11, %s851_s25  ;;  %p859_p13 = scmp.lt.u32.totalorder %s851_s25, %s1135_s13 }
 0x1f2   : > { %p853_p7 = pnand %p852_p6, %p1026_p4 }
 0x1f3   : > { %p858_p12 = por %p857_p11, %p856_p10 }
 0x1f4   : > { %p854_p9 = pneg %p853_p7 }
 0x1f5   : > { %p860_p0 = por %p859_p13, %p858_p12 }
 0x1f7   : > { %p861_p1 = pnand %p860_p0, %p854_p9 }
 0x1f9   : > { %864 = shalt.err (!%p861_p1)
}
 0x1fa   : > { %s953_s15 = smov 128   ;;  %s954_s17 = smov 8   ;;  %v505_v62 = vpop.f32.mrb[4].mxu1  ;;  %v467_v63 = vld [vmem:[%s1115_s8 + $0x8] sm:$0xff] }
 0x1fb   : > { %767 = dma.vmem_to_hbm [thread:$0]  (%p1026_p4), %s1137_s10, 256, %s1135_s13, %s532_s14, %s953_s15, %s953_s15, %s954_s17   ;;  %v512_v0 = vadd.f32 %v505_v62, %v466_v61  ;;  %v765_v1 = vpop.f32.mrb[5].mxu1 }
 0x1fc   : > { %s571_s24 = sshll.u32 %s1115_s8, 4  ;;  %v508_v2 = vpop.f32.mrb[6].mxu1  ;;  %s1178_s29 = scalar_lea.hbm %s1237_s4, %s731_s9  ;;  %s1180_s24 = int_to_ptr.vmem [resolvable:$true] %s571_s24 }
 0x1fd   : > { %514 = vst.msk [vmem:[%s1115_s8] sm:$0xff] %vm271_vm4, %v512_v0  ;;  %v513_v3 = vadd.f32 %v508_v2, %v467_v63  ;;  %v766_v4 = vpop.f32.mrb[7].mxu1  ;;  %s537_s10 = scalar_lea.sflag [#allocation5], %s1107_s7  ;;  %s865_s13 = scalar_lea.vmem %s1180_s24, 256 }
 0x1fe   : > { %p866_p2 = scmp.ne.s32.totalorder %s1180_s24, %s865_s13  ;;  %s955_s14 = smov [#allocation4]  }
 0x1ff   : > { %515 = vst.msk [vmem:[%s1115_s8 + $0x8] sm:$0xff] %vm271_vm4, %v513_v3  ;;  %s869_s21 = sshll.u32 %s955_s14, 4  ;;  %s870_s21 = int_to_ptr.vmem [resolvable:$false] %s869_s21 }
 0x200   : > { %p867_p3 = pnand %p866_p2, %p1026_p4  ;;  %s871_s11 = scalar_lea.vmem %s870_s21, 512 }
 0x201   : > { %p872_p6 = scmp.lt.s32.totalorder %s1180_s24, %s870_s21  ;;  %p873_p7 = scmp.lt.s32.totalorder %s871_s11, %s865_s13 }
 0x202   : > { %p868_p5 = pneg %p867_p3 }
 0x203   : > { %p874_p9 = por %p873_p7, %p872_p6 }
 0x205   : > { %p875_p10 = pnand %p874_p9, %p868_p5 }
 0x207   : > { %878 = shalt.err (!%p875_p10)
}
 0x208   : > { %s879_s8 = scalar_lea.hbm %s1178_s29, 256  ;;  %s883_s16 = scalar_lea.hbm %s1237_s4, 512 }
 0x209   : > { %p880_p11 = scmp.ne.s32.totalorder %s1178_s29, %s879_s8  ;;  %p884_p0 = scmp.lt.u32.totalorder %s1178_s29, %s1237_s4 }
 0x20a   : > { %p885_p1 = scmp.lt.u32.totalorder %s883_s16, %s879_s8  ;;  %p887_p3 = scmp.lt.u32.totalorder %s879_s8, %s1178_s29 }
 0x20b   : > { %p881_p12 = pnand %p880_p11, %p1026_p4 }
 0x20c   : > { %p886_p2 = por %p885_p1, %p884_p0 }
 0x20d   : > { %p882_p13 = pneg %p881_p12 }
 0x20e   : > { %p888_p5 = por %p887_p3, %p886_p2 }
 0x210   : > { %p889_p6 = pnand %p888_p5, %p882_p13 }
 0x212   : > { %892 = shalt.err (!%p889_p6)
}
 0x213   : > { %768 = dma.vmem_to_hbm [thread:$0]  (%p1026_p4), %s1180_s24, 256, %s1178_s29, %s537_s10, %s953_s15, %s953_s15, %s954_s17  }
 0x214 PF: > { %p778_p7 = scmp.ge.s32.totalorder %s947_s23, 2  ;;  %s589_s13 = sand.u32 1, %s927_s18  }
 0x215   : > { %s590_s14 = scalar_lea.sflag [#allocation3], %s589_s13 }
 0x216   : > { %p772_p9 = pnand %p778_p7, %p1033_p8 }
 0x218   : > { %918 = dma.done.wait (!%p772_p9), %s590_s14, 256  }
 0x219   : > { %920 = vsyncadd (!%p772_p9), %s590_s14, 4294967040  ;;  %s599_s28 = scalar_lea.sflag [#allocation5], %s589_s13 }
 0x21a   : > { %922 = dma.done.wait (!%p772_p9), %s599_s28, 256  }
 0x21b   : > { %924 = vsyncadd (!%p772_p9), %s599_s28, 4294967040  ;;  %s22_s23 = sadd.s32 1, %s947_s23   ;;  %s1241_s18 = smov %s931_s19 }
 0x21c   : > { %p19_p10 = scmp.ge.s32.totalorder %s22_s23, 4   ;;  %s1242_s19 = smov %s935_s20 }
 0x21d   : > { %s1243_s20 = smov %s1039_s6  ;;  %s1244_s21 = smov %s943_s22 }
 0x21e   : > { %s1245_s22 = smov %s1247_s26  ;;  %21 = sbr.rel (!%p19_p10) target bundleno = 6 (0x6), region = 100 }
 0x225   :  { %612 = vsyncpa [#allocation3], 1 }
 0x226   :  { %614 = vsyncpa [#allocation3 + $0x1], 1 }
 0x227   :  { %615 = vsyncpa [#allocation5], 1 }
 0x228   :  { %617 = vsyncpa [#allocation5 + $0x1], 1 }

</bundles_post_ra>
